<compile_context>
chip_gen: v5e
topology: v5e:2x2
jax: 0.10.0
libtpu: 0.0.40
codegen_flags: <defaults>
</compile_context>

<pallas_src>
import functools

import jax
import jax.numpy as jnp
from jax import lax
from jax.experimental import pallas as pl
from jax.experimental.pallas import tpu as pltpu

NUM_EXPERTS = 8
TOP_K = 2


def _round_up(x, m):
    return (x + m - 1) // m * m


def _erf(x):
    # Abramowitz & Stegun 7.1.26 (max abs err ~1.5e-7) — exp/mul/add/select only,
    # so it lowers on every TPU generation without relying on an erf lowering.
    p = 0.3275911
    a1, a2, a3, a4, a5 = (0.254829592, -0.284496736, 1.421413741,
                          -1.453152027, 1.061405429)
    z = jnp.abs(x)
    t = 1.0 / (1.0 + p * z)
    poly = t * (a1 + t * (a2 + t * (a3 + t * (a4 + t * a5))))
    y = 1.0 - poly * jnp.exp(-z * z)
    return jnp.where(x < 0.0, -y, y)


def _gelu_exact(x):
    # nn.GELU() default = exact (erf-based) GELU.
    return 0.5 * x * (1.0 + _erf(x * 0.7071067811865476))


def _moe_ffn_kernel(x_ref, gate_ref, w1_ref, b1_ref, eid_ref, w2_ref, b2_ref,
                    out_ref, acc_ref, wsum_ref, idx1_ref, idx2_ref):
    k = pl.program_id(1)

    # ---- routing: once per token tile, cached in scratch (stays exact f32) ----
    @pl.when(k == 0)
    def _():
        x = x_ref[...]                                          # (TM, D) f32
        tm = x.shape[0]
        ne = gate_ref.shape[1]
        logits = jnp.dot(x, gate_ref[...], preferred_element_type=jnp.float32)
        lmax = jnp.max(logits, axis=-1, keepdims=True)
        p = jnp.exp(logits - lmax)
        gates = p / jnp.sum(p, axis=-1, keepdims=True)          # f32 softmax
        cols = lax.broadcasted_iota(jnp.int32, (tm, ne), 1)
        m1 = jnp.max(gates, axis=-1, keepdims=True)
        idx1 = jnp.min(jnp.where(gates == m1, cols, ne), axis=-1, keepdims=True)
        g2 = jnp.where(cols == idx1, -jnp.inf, gates)
        m2 = jnp.max(g2, axis=-1, keepdims=True)
        idx2 = jnp.min(jnp.where(g2 == m2, cols, ne), axis=-1, keepdims=True)
        # Module quirk: each selected expert is scaled by the SUM of both gates.
        wsum_ref[...] = m1 + m2
        idx1_ref[...] = idx1
        idx2_ref[...] = idx2
        acc_ref[...] = jnp.zeros_like(acc_ref)

    # ---- this hidden chunk: first layer + GELU + masked second layer ---------
    xb = x_ref[...].astype(w1_ref.dtype)                        # bf16 MXU input
    z = jnp.dot(xb, w1_ref[...], preferred_element_type=jnp.float32)  # (TM, CK)
    h = _gelu_exact(z + b1_ref[...])                             # f32 VPU/EUP
    sel = (eid_ref[...] == idx1_ref[...]) | (eid_ref[...] == idx2_ref[...])
    hm = jnp.where(sel, h, 0.0).astype(w2_ref.dtype)             # 0/1 mask only
    acc_ref[...] += jnp.dot(hm, w2_ref[...], preferred_element_type=jnp.float32)

    # ---- finalize: gated b2 + per-row w_sum scale on the (TM, D) result ------
    @pl.when(k == pl.num_programs(1) - 1)
    def _():
        tm = out_ref.shape[0]
        ne = b2_ref.shape[0]
        cols = lax.broadcasted_iota(jnp.int32, (tm, ne), 1)
        sel_e = (cols == idx1_ref[...]) | (cols == idx2_ref[...])
        bias = jnp.dot(sel_e.astype(jnp.float32), b2_ref[...],
                       preferred_element_type=jnp.float32)        # (TM, D)
        out_ref[...] = (wsum_ref[...] * (acc_ref[...] + bias)).astype(out_ref.dtype)


def _default_vmem_limit():
    try:
        kind = jax.devices()[0].device_kind.lower()
    except Exception:
        return None
    if "v7" in kind:
        return 52 * 1024 * 1024     # headroom below v7x's 64 MiB/TC physical cap
    if "v6" in kind or "v5" in kind:
        return 100 * 1024 * 1024    # well above the 16/32 MiB scoped defaults
    return None                     # unknown/older chips: keep compiler default


@functools.partial(
    jax.jit,
    static_argnames=("token_tile", "hidden_chunk", "compute_dtype",
                     "vmem_limit_bytes"))
def moe_ffn(x, gate_w, w1, b1, w2, b2, *, token_tile=512, hidden_chunk=512,
            compute_dtype=jnp.bfloat16, vmem_limit_bytes=None):
    B, S, D = x.shape
    E, _, C = w1.shape
    T = B * S
    EC = E * C

    # -- token tiling: shrink for small T; prefer >=2 steps so the "parallel"
    #    axis can shard across v7x's two TensorCores --------------------------
    tt = min(token_tile, _round_up(T, 8))
    if pl.cdiv(T, tt) < 2:
        half = _round_up(pl.cdiv(T, 2), 8)
        if 8 <= half < tt:
            tt = half
    Tp = _round_up(T, tt)

    xf = x.reshape(T, D).astype(jnp.float32)
    if Tp != T:
        # Padded rows compute harmless finite garbage and are sliced off below.
        xf = jnp.pad(xf, ((0, Tp - T), (0, 0)))

    # -- hidden (E*C) chunking: bounds (TM, chunk) intermediates and lets the
    #    weight slabs stream (mandatory for v7x at production D/EC) ------------
    if EC <= hidden_chunk:
        chunk, ECp = EC, EC
    else:
        assert hidden_chunk % 256 == 0, "hidden_chunk must be a multiple of 256"
        chunk = hidden_chunk
        ECp = _round_up(EC, chunk)

    # -- weight repacking (once, outside the kernel) -> lane-dense 2-D slabs ---
    w1_2d = jnp.transpose(w1, (1, 0, 2)).reshape(D, EC)   # column block e == W1_e
    w2_2d = w2.reshape(EC, D)                             # row block e == W2_e
    b1_2d = b1.reshape(1, EC).astype(jnp.float32)
    eid = jnp.repeat(jnp.arange(E, dtype=jnp.int32), C).reshape(1, EC)
    if ECp != EC:
        w1_2d = jnp.pad(w1_2d, ((0, 0), (0, ECp - EC)))
        w2_2d = jnp.pad(w2_2d, ((0, ECp - EC), (0, 0)))
        b1_2d = jnp.pad(b1_2d, ((0, 0), (0, ECp - EC)))
        eid = jnp.pad(eid, ((0, 0), (0, ECp - EC)), constant_values=E)  # never hit
    w1c = w1_2d.astype(compute_dtype)     # bf16 MXU inputs (f32 accumulation)
    w2c = w2_2d.astype(compute_dtype)
    gate_f = gate_w.astype(jnp.float32)   # routing stays exact f32
    b2_f = b2.astype(jnp.float32)

    nk = ECp // chunk
    grid = (Tp // tt, nk)

    if vmem_limit_bytes is None:
        vmem_limit_bytes = _default_vmem_limit()

    def _spec(shape, index_map, *, single_buffer=False):
        # Buffered(1): constant-index weight blocks need no double-buffering.
        if single_buffer and hasattr(pl, "Buffered"):
            try:
                return pl.BlockSpec(shape, index_map, pipeline_mode=pl.Buffered(1))
            except TypeError:
                pass
        return pl.BlockSpec(shape, index_map)

    const_over_grid = (nk == 1)   # chunked slabs collapse to a constant block

    out = pl.pallas_call(
        _moe_ffn_kernel,
        out_shape=jax.ShapeDtypeStruct((Tp, D), x.dtype),
        grid_spec=pltpu.PrefetchScalarGridSpec(
            num_scalar_prefetch=0,
            grid=grid,
            in_specs=[
                pl.BlockSpec((tt, D), lambda t, k: (t, 0)),                    # x (f32)
                _spec((D, E), lambda t, k: (0, 0), single_buffer=True),        # gate_w
                _spec((D, chunk), lambda t, k: (0, k),
                      single_buffer=const_over_grid),                          # W1cat
                _spec((1, chunk), lambda t, k: (0, k),
                      single_buffer=const_over_grid),                          # b1
                _spec((1, chunk), lambda t, k: (0, k),
                      single_buffer=const_over_grid),                          # expert ids
                _spec((chunk, D), lambda t, k: (k, 0),
                      single_buffer=const_over_grid),                          # W2cat
                _spec((E, D), lambda t, k: (0, 0), single_buffer=True),        # b2
            ],
            out_specs=pl.BlockSpec((tt, D), lambda t, k: (t, 0)),
            scratch_shapes=[
                pltpu.VMEM((tt, D), jnp.float32),   # accumulator
                pltpu.VMEM((tt, 1), jnp.float32),   # w_sum = g1 + g2
                pltpu.VMEM((tt, 1), jnp.int32),     # top-1 expert id
                pltpu.VMEM((tt, 1), jnp.int32),     # top-2 expert id
            ]),
        compiler_params=pltpu.CompilerParams(
            dimension_semantics=("parallel", "arbitrary"),
            vmem_limit_bytes=vmem_limit_bytes),
    )(xf, gate_f, w1c, b1_2d, eid, w2c, b2_f)
    return out[:T].reshape(B, S, D)


def moe_ffn_reference(x, gate_w, w1, b1, w2, b2):
    """Pure-JAX reference mirroring the PyTorch forward (inference, dropout=id)."""
    B, S, D = x.shape
    xf = x.reshape(-1, D)
    hp = jax.lax.Precision.HIGHEST
    gates = jax.nn.softmax(jnp.dot(xf, gate_w, precision=hp), axis=-1)
    topk_g, topk_i = lax.top_k(gates, TOP_K)
    w_sum = topk_g.sum(-1, keepdims=True)
    out = jnp.zeros_like(xf)
    for i in range(NUM_EXPERTS):
        mask = (topk_i == i).any(-1)[:, None]
        h = jax.nn.gelu(jnp.dot(xf, w1[i], precision=hp) + b1[i], approximate=False)
        y = jnp.dot(h, w2[i], precision=hp) + b2[i]
        out = out + jnp.where(mask, y * w_sum, 0.0)
    return out.reshape(B, S, D)


def _init_linear(key, fan_in, fan_out, bias=True):
    """PyTorch nn.Linear-style uniform init; weight stored as (in, out)."""
    k = 1.0 / (fan_in ** 0.5)
    kw, kb = jax.random.split(key)
    w = jax.random.uniform(kw, (fan_in, fan_out), jnp.float32, -k, k)
    if not bias:
        return w
    b = jax.random.uniform(kb, (fan_out,), jnp.float32, -k, k)
    return w, b


if __name__ == "__main__":
    # Small config consistent with the module: d_model=32, dim_feedforward=64
    #  -> expert_capacity = 64 // 8 = 8, num_experts = 8, top_k = 2.
    batch, seq, d_model, dim_feedforward = 2, 8, 32, 64
    expert_capacity = dim_feedforward // NUM_EXPERTS

    root = jax.random.PRNGKey(0)
    keys = jax.random.split(root, 2 + 2 * NUM_EXPERTS)

    x = jax.random.normal(keys[0], (batch, seq, d_model), jnp.float32)
    gate_w = _init_linear(keys[1], d_model, NUM_EXPERTS, bias=False)

    w1_list, b1_list, w2_list, b2_list = [], [], [], []
    for i in range(NUM_EXPERTS):
        w1_i, b1_i = _init_linear(keys[2 + 2 * i], d_model, expert_capacity)
        w2_i, b2_i = _init_linear(keys[3 + 2 * i], expert_capacity, d_model)
        w1_list.append(w1_i); b1_list.append(b1_i)
        w2_list.append(w2_i); b2_list.append(b2_i)
    w1 = jnp.stack(w1_list)   # (E, D, C)
    b1 = jnp.stack(b1_list)   # (E, C)
    w2 = jnp.stack(w2_list)   # (E, C, D)
    b2 = jnp.stack(b2_list)   # (E, D)

    ref = moe_ffn_reference(x, gate_w, w1, b1, w2, b2)

    # Exact-algebra check: f32 MXU path (routing, GEMM fusion, masking, gated b2).
    out_f32 = jax.block_until_ready(
        moe_ffn(x, gate_w, w1, b1, w2, b2, compute_dtype=jnp.float32))
    assert out_f32.shape == x.shape and out_f32.dtype == x.dtype
    assert jnp.allclose(out_f32, ref, rtol=1e-4, atol=1e-4), "f32 path mismatch"

    # Production path: bf16 MXU inputs, f32 routing / accumulation / elementwise.
    out_bf16 = jax.block_until_ready(moe_ffn(x, gate_w, w1, b1, w2, b2))
    assert out_bf16.shape == x.shape and out_bf16.dtype == x.dtype
    assert jnp.allclose(out_bf16, ref, rtol=3e-2, atol=3e-2), "bf16 path mismatch"

    print("KERNEL_OK")
</pallas_src>

<mosaic_0001>
module attributes {stable_mosaic.version = 11 : i64} {
  func.func @_moe_ffn_kernel(%arg0: i32, %arg1: i32, %arg2: memref<8x32xf32, #tpu.memory_space<vmem>>, %arg3: memref<32x8xf32, #tpu.memory_space<vmem>>, %arg4: memref<32x64xf32, #tpu.memory_space<vmem>>, %arg5: memref<1x64xf32, #tpu.memory_space<vmem>>, %arg6: memref<1x64xi32, #tpu.memory_space<vmem>>, %arg7: memref<64x32xf32, #tpu.memory_space<vmem>>, %arg8: memref<8x32xf32, #tpu.memory_space<vmem>>, %arg9: memref<8x32xf32, #tpu.memory_space<vmem>>, %arg10: memref<8x32xf32, #tpu.memory_space<vmem>>, %arg11: memref<8x1xf32, #tpu.memory_space<vmem>>, %arg12: memref<8x1xi32, #tpu.memory_space<vmem>>, %arg13: memref<8x1xi32, #tpu.memory_space<vmem>>) attributes {dimension_semantics = [#tpu.dimension_semantics<parallel>, #tpu.dimension_semantics<arbitrary>], iteration_bounds = array<i64: 2, 1>, scalar_prefetch = 0 : i64, scratch_operands = 4 : i64, tpu.core_type = #tpu.core_type<tc>, window_params = [{transform_indices = @transform_0, window_bounds = array<i64: 8, 32>}, {pipeline_mode = #tpu.pipeline_mode<synchronous>, transform_indices = @transform_1, window_bounds = array<i64: 32, 8>}, {pipeline_mode = #tpu.pipeline_mode<synchronous>, transform_indices = @transform_2, window_bounds = array<i64: 32, 64>}, {pipeline_mode = #tpu.pipeline_mode<synchronous>, transform_indices = @transform_3, window_bounds = array<i64: 1, 64>}, {pipeline_mode = #tpu.pipeline_mode<synchronous>, transform_indices = @transform_4, window_bounds = array<i64: 1, 64>}, {pipeline_mode = #tpu.pipeline_mode<synchronous>, transform_indices = @transform_5, window_bounds = array<i64: 64, 32>}, {pipeline_mode = #tpu.pipeline_mode<synchronous>, transform_indices = @transform_6, window_bounds = array<i64: 8, 32>}, {transform_indices = @transform_7, window_bounds = array<i64: 8, 32>}]} {
    %c0_i32 = arith.constant 0 : i32
    %0 = arith.cmpi eq, %arg1, %c0_i32 : i32
    %1 = arith.extui %0 : i1 to i32
    %c0_i32_0 = arith.constant 0 : i32
    %2 = arith.cmpi ne, %1, %c0_i32_0 : i32
    scf.if %2 {
      %c0_39 = arith.constant 0 : index
      %c0_40 = arith.constant 0 : index
      %70 = vector.load %arg2[%c0_39, %c0_40] : memref<8x32xf32, #tpu.memory_space<vmem>>, vector<8x32xf32>
      %c0_41 = arith.constant 0 : index
      %c0_42 = arith.constant 0 : index
      %71 = vector.load %arg3[%c0_41, %c0_42] : memref<32x8xf32, #tpu.memory_space<vmem>>, vector<32x8xf32>
      %cst_43 = arith.constant dense<0.000000e+00> : vector<8x8xf32>
      %72 = tpu.matmul %70, %71, %cst_43 {dimension_numbers = #tpu.dot_dimension_numbers<[1], [0], [0], [1], [0, 0, 1, 1], [], []>} : vector<8x32xf32>, vector<32x8xf32>, vector<8x8xf32> -> vector<8x8xf32>
      %cst_44 = arith.constant dense<0xFF800000> : vector<8xf32>
      %73 = vector.multi_reduction <maximumf>, %72, %cst_44 [1] : vector<8x8xf32> to vector<8xf32>
      %74 = vector.shape_cast %73 : vector<8xf32> to vector<8x1xf32>
      %75 = vector.broadcast %74 : vector<8x1xf32> to vector<8x8xf32>
      %76 = arith.subf %72, %75 : vector<8x8xf32>
      %77 = math.exp %76 : vector<8x8xf32>
      %cst_45 = arith.constant dense<0.000000e+00> : vector<8xf32>
      %78 = vector.multi_reduction <add>, %77, %cst_45 [1] : vector<8x8xf32> to vector<8xf32>
      %79 = vector.shape_cast %78 : vector<8xf32> to vector<8x1xf32>
      %80 = vector.broadcast %79 : vector<8x1xf32> to vector<8x8xf32>
      %81 = arith.divf %77, %80 : vector<8x8xf32>
      %82 = tpu.iota {dimensions = array<i32: 1>} : vector<8x8xi32>
      %cst_46 = arith.constant dense<0xFF800000> : vector<8xf32>
      %83 = vector.multi_reduction <maximumf>, %81, %cst_46 [1] : vector<8x8xf32> to vector<8xf32>
      %84 = vector.shape_cast %83 : vector<8xf32> to vector<8x1xf32>
      %85 = vector.broadcast %84 : vector<8x1xf32> to vector<8x8xf32>
      %86 = arith.cmpf oeq, %81, %85 : vector<8x8xf32>
      %c8_i32 = arith.constant 8 : i32
      %87 = vector.broadcast %c8_i32 : i32 to vector<8x8xi32>
      %88 = arith.select %86, %82, %87 : vector<8x8xi1>, vector<8x8xi32>
      %cst_47 = arith.constant dense<2147483647> : vector<8xi32>
      %89 = vector.multi_reduction <minsi>, %88, %cst_47 [1] : vector<8x8xi32> to vector<8xi32>
      %90 = vector.shape_cast %89 : vector<8xi32> to vector<8x1xi32>
      %91 = vector.broadcast %90 : vector<8x1xi32> to vector<8x8xi32>
      %92 = arith.cmpi eq, %82, %91 : vector<8x8xi32>
      %cst_48 = arith.constant 0xFF800000 : f32
      %93 = vector.broadcast %cst_48 : f32 to vector<8x8xf32>
      %94 = arith.select %92, %93, %81 : vector<8x8xi1>, vector<8x8xf32>
      %cst_49 = arith.constant dense<0xFF800000> : vector<8xf32>
      %95 = vector.multi_reduction <maximumf>, %94, %cst_49 [1] : vector<8x8xf32> to vector<8xf32>
      %96 = vector.shape_cast %95 : vector<8xf32> to vector<8x1xf32>
      %97 = vector.broadcast %96 : vector<8x1xf32> to vector<8x8xf32>
      %98 = arith.cmpf oeq, %94, %97 : vector<8x8xf32>
      %c8_i32_50 = arith.constant 8 : i32
      %99 = vector.broadcast %c8_i32_50 : i32 to vector<8x8xi32>
      %100 = arith.select %98, %82, %99 : vector<8x8xi1>, vector<8x8xi32>
      %cst_51 = arith.constant dense<2147483647> : vector<8xi32>
      %101 = vector.multi_reduction <minsi>, %100, %cst_51 [1] : vector<8x8xi32> to vector<8xi32>
      %102 = vector.shape_cast %101 : vector<8xi32> to vector<8x1xi32>
      %103 = arith.addf %84, %96 : vector<8x1xf32>
      %c0_52 = arith.constant 0 : index
      %c0_53 = arith.constant 0 : index
      %104 = vector.load %arg11[%c0_52, %c0_53] : memref<8x1xf32, #tpu.memory_space<vmem>>, vector<8x1xf32>
      tpu.vector_store %arg11[%c0_52, %c0_53], %103 {strides = array<i32>} : memref<8x1xf32, #tpu.memory_space<vmem>>, vector<8x1xf32>,
      %c0_54 = arith.constant 0 : index
      %c0_55 = arith.constant 0 : index
      %105 = vector.load %arg12[%c0_54, %c0_55] : memref<8x1xi32, #tpu.memory_space<vmem>>, vector<8x1xi32>
      tpu.vector_store %arg12[%c0_54, %c0_55], %90 {strides = array<i32>} : memref<8x1xi32, #tpu.memory_space<vmem>>, vector<8x1xi32>,
      %c0_56 = arith.constant 0 : index
      %c0_57 = arith.constant 0 : index
      %106 = vector.load %arg13[%c0_56, %c0_57] : memref<8x1xi32, #tpu.memory_space<vmem>>, vector<8x1xi32>
      tpu.vector_store %arg13[%c0_56, %c0_57], %102 {strides = array<i32>} : memref<8x1xi32, #tpu.memory_space<vmem>>, vector<8x1xi32>,
      %cst_58 = arith.constant 0.000000e+00 : f32
      %107 = vector.broadcast %cst_58 : f32 to vector<8x32xf32>
      %c0_59 = arith.constant 0 : index
      %c0_60 = arith.constant 0 : index
      %108 = vector.load %arg10[%c0_59, %c0_60] : memref<8x32xf32, #tpu.memory_space<vmem>>, vector<8x32xf32>
      tpu.vector_store %arg10[%c0_59, %c0_60], %107 {strides = array<i32>} : memref<8x32xf32, #tpu.memory_space<vmem>>, vector<8x32xf32>,
    } else {
    }
    %c0 = arith.constant 0 : index
    %c0_1 = arith.constant 0 : index
    %3 = vector.load %arg2[%c0, %c0_1] : memref<8x32xf32, #tpu.memory_space<vmem>>, vector<8x32xf32>
    %c0_2 = arith.constant 0 : index
    %c0_3 = arith.constant 0 : index
    %4 = vector.load %arg4[%c0_2, %c0_3] : memref<32x64xf32, #tpu.memory_space<vmem>>, vector<32x64xf32>
    %cst = arith.constant dense<0.000000e+00> : vector<8x64xf32>
    %5 = tpu.matmul %3, %4, %cst {dimension_numbers = #tpu.dot_dimension_numbers<[1], [0], [0], [1], [0, 0, 1, 1], [], []>} : vector<8x32xf32>, vector<32x64xf32>, vector<8x64xf32> -> vector<8x64xf32>
    %c0_4 = arith.constant 0 : index
    %c0_5 = arith.constant 0 : index
    %6 = vector.load %arg5[%c0_4, %c0_5] : memref<1x64xf32, #tpu.memory_space<vmem>>, vector<1x64xf32>
    %7 = vector.broadcast %6 : vector<1x64xf32> to vector<8x64xf32>
    %8 = arith.addf %5, %7 : vector<8x64xf32>
    %cst_6 = arith.constant 5.000000e-01 : f32
    %9 = vector.broadcast %cst_6 : f32 to vector<8x64xf32>
    %10 = arith.mulf %9, %8 : vector<8x64xf32>
    %cst_7 = arith.constant 0.707106769 : f32
    %11 = vector.broadcast %cst_7 : f32 to vector<8x64xf32>
    %12 = arith.mulf %8, %11 : vector<8x64xf32>
    %13 = math.absf %12 : vector<8x64xf32>
    %cst_8 = arith.constant 0.327591091 : f32
    %14 = vector.broadcast %cst_8 : f32 to vector<8x64xf32>
    %15 = arith.mulf %14, %13 : vector<8x64xf32>
    %cst_9 = arith.constant 1.000000e+00 : f32
    %16 = vector.broadcast %cst_9 : f32 to vector<8x64xf32>
    %17 = arith.addf %16, %15 : vector<8x64xf32>
    %cst_10 = arith.constant 1.000000e+00 : f32
    %18 = vector.broadcast %cst_10 : f32 to vector<8x64xf32>
    %19 = arith.divf %18, %17 : vector<8x64xf32>
    %cst_11 = arith.constant 1.06140542 : f32
    %20 = vector.broadcast %cst_11 : f32 to vector<8x64xf32>
    %21 = arith.mulf %19, %20 : vector<8x64xf32>
    %cst_12 = arith.constant -1.45315206 : f32
    %22 = vector.broadcast %cst_12 : f32 to vector<8x64xf32>
    %23 = arith.addf %22, %21 : vector<8x64xf32>
    %24 = arith.mulf %19, %23 : vector<8x64xf32>
    %cst_13 = arith.constant 1.42141378 : f32
    %25 = vector.broadcast %cst_13 : f32 to vector<8x64xf32>
    %26 = arith.addf %25, %24 : vector<8x64xf32>
    %27 = arith.mulf %19, %26 : vector<8x64xf32>
    %cst_14 = arith.constant -0.284496725 : f32
    %28 = vector.broadcast %cst_14 : f32 to vector<8x64xf32>
    %29 = arith.addf %28, %27 : vector<8x64xf32>
    %30 = arith.mulf %19, %29 : vector<8x64xf32>
    %cst_15 = arith.constant 0.254829586 : f32
    %31 = vector.broadcast %cst_15 : f32 to vector<8x64xf32>
    %32 = arith.addf %31, %30 : vector<8x64xf32>
    %33 = arith.mulf %19, %32 : vector<8x64xf32>
    %cst_16 = arith.constant 0.000000e+00 : f32
    %34 = vector.broadcast %cst_16 : f32 to vector<8x64xf32>
    %35 = arith.subf %34, %13 : vector<8x64xf32>
    %36 = arith.mulf %35, %13 : vector<8x64xf32>
    %37 = math.exp %36 : vector<8x64xf32>
    %38 = arith.mulf %33, %37 : vector<8x64xf32>
    %cst_17 = arith.constant 1.000000e+00 : f32
    %39 = vector.broadcast %cst_17 : f32 to vector<8x64xf32>
    %40 = arith.subf %39, %38 : vector<8x64xf32>
    %cst_18 = arith.constant 0.000000e+00 : f32
    %41 = vector.broadcast %cst_18 : f32 to vector<8x64xf32>
    %42 = arith.cmpf olt, %12, %41 : vector<8x64xf32>
    %cst_19 = arith.constant 0.000000e+00 : f32
    %43 = vector.broadcast %cst_19 : f32 to vector<8x64xf32>
    %44 = arith.subf %43, %40 : vector<8x64xf32>
    %45 = arith.select %42, %44, %40 : vector<8x64xi1>, vector<8x64xf32>
    %cst_20 = arith.constant 1.000000e+00 : f32
    %46 = vector.broadcast %cst_20 : f32 to vector<8x64xf32>
    %47 = arith.addf %46, %45 : vector<8x64xf32>
    %48 = arith.mulf %10, %47 : vector<8x64xf32>
    %c0_21 = arith.constant 0 : index
    %c0_22 = arith.constant 0 : index
    %49 = vector.load %arg6[%c0_21, %c0_22] : memref<1x64xi32, #tpu.memory_space<vmem>>, vector<1x64xi32>
    %c0_23 = arith.constant 0 : index
    %c0_24 = arith.constant 0 : index
    %50 = vector.load %arg12[%c0_23, %c0_24] : memref<8x1xi32, #tpu.memory_space<vmem>>, vector<8x1xi32>
    %51 = vector.broadcast %49 : vector<1x64xi32> to vector<8x64xi32>
    %52 = vector.broadcast %50 : vector<8x1xi32> to vector<8x64xi32>
    %53 = arith.cmpi eq, %51, %52 : vector<8x64xi32>
    %c0_25 = arith.constant 0 : index
    %c0_26 = arith.constant 0 : index
    %54 = vector.load %arg6[%c0_25, %c0_26] : memref<1x64xi32, #tpu.memory_space<vmem>>, vector<1x64xi32>
    %c0_27 = arith.constant 0 : index
    %c0_28 = arith.constant 0 : index
    %55 = vector.load %arg13[%c0_27, %c0_28] : memref<8x1xi32, #tpu.memory_space<vmem>>, vector<8x1xi32>
    %56 = vector.broadcast %54 : vector<1x64xi32> to vector<8x64xi32>
    %57 = vector.broadcast %55 : vector<8x1xi32> to vector<8x64xi32>
    %58 = arith.cmpi eq, %56, %57 : vector<8x64xi32>
    %59 = arith.ori %53, %58 : vector<8x64xi1>
    %cst_29 = arith.constant 0.000000e+00 : f32
    %60 = vector.broadcast %cst_29 : f32 to vector<8x64xf32>
    %61 = arith.select %59, %48, %60 : vector<8x64xi1>, vector<8x64xf32>
    %c0_30 = arith.constant 0 : index
    %c0_31 = arith.constant 0 : index
    %62 = vector.load %arg10[%c0_30, %c0_31] : memref<8x32xf32, #tpu.memory_space<vmem>>, vector<8x32xf32>
    %c0_32 = arith.constant 0 : index
    %c0_33 = arith.constant 0 : index
    %63 = vector.load %arg7[%c0_32, %c0_33] : memref<64x32xf32, #tpu.memory_space<vmem>>, vector<64x32xf32>
    %cst_34 = arith.constant dense<0.000000e+00> : vector<8x32xf32>
    %64 = tpu.matmul %61, %63, %cst_34 {dimension_numbers = #tpu.dot_dimension_numbers<[1], [0], [0], [1], [0, 0, 1, 1], [], []>} : vector<8x64xf32>, vector<64x32xf32>, vector<8x32xf32> -> vector<8x32xf32>
    %65 = arith.addf %62, %64 : vector<8x32xf32>
    %c0_35 = arith.constant 0 : index
    %c0_36 = arith.constant 0 : index
    %66 = vector.load %arg10[%c0_35, %c0_36] : memref<8x32xf32, #tpu.memory_space<vmem>>, vector<8x32xf32>
    tpu.vector_store %arg10[%c0_35, %c0_36], %65 {strides = array<i32>} : memref<8x32xf32, #tpu.memory_space<vmem>>, vector<8x32xf32>,
    %c0_i32_37 = arith.constant 0 : i32
    %67 = arith.cmpi eq, %arg1, %c0_i32_37 : i32
    %68 = arith.extui %67 : i1 to i32
    %c0_i32_38 = arith.constant 0 : i32
    %69 = arith.cmpi ne, %68, %c0_i32_38 : i32
    scf.if %69 {
      %70 = tpu.iota {dimensions = array<i32: 1>} : vector<8x8xi32>
      %c0_39 = arith.constant 0 : index
      %c0_40 = arith.constant 0 : index
      %71 = vector.load %arg12[%c0_39, %c0_40] : memref<8x1xi32, #tpu.memory_space<vmem>>, vector<8x1xi32>
      %72 = vector.broadcast %71 : vector<8x1xi32> to vector<8x8xi32>
      %73 = arith.cmpi eq, %70, %72 : vector<8x8xi32>
      %c0_41 = arith.constant 0 : index
      %c0_42 = arith.constant 0 : index
      %74 = vector.load %arg13[%c0_41, %c0_42] : memref<8x1xi32, #tpu.memory_space<vmem>>, vector<8x1xi32>
      %75 = vector.broadcast %74 : vector<8x1xi32> to vector<8x8xi32>
      %76 = arith.cmpi eq, %70, %75 : vector<8x8xi32>
      %77 = arith.ori %73, %76 : vector<8x8xi1>
      %78 = arith.extui %77 : vector<8x8xi1> to vector<8x8xi32>
      %79 = arith.sitofp %78 : vector<8x8xi32> to vector<8x8xf32>
      %c0_43 = arith.constant 0 : index
      %c0_44 = arith.constant 0 : index
      %80 = vector.load %arg8[%c0_43, %c0_44] : memref<8x32xf32, #tpu.memory_space<vmem>>, vector<8x32xf32>
      %cst_45 = arith.constant dense<0.000000e+00> : vector<8x32xf32>
      %81 = tpu.matmul %79, %80, %cst_45 {dimension_numbers = #tpu.dot_dimension_numbers<[1], [0], [0], [1], [0, 0, 1, 1], [], []>} : vector<8x8xf32>, vector<8x32xf32>, vector<8x32xf32> -> vector<8x32xf32>
      %c0_46 = arith.constant 0 : index
      %c0_47 = arith.constant 0 : index
      %82 = vector.load %arg11[%c0_46, %c0_47] : memref<8x1xf32, #tpu.memory_space<vmem>>, vector<8x1xf32>
      %c0_48 = arith.constant 0 : index
      %c0_49 = arith.constant 0 : index
      %83 = vector.load %arg10[%c0_48, %c0_49] : memref<8x32xf32, #tpu.memory_space<vmem>>, vector<8x32xf32>
      %84 = arith.addf %83, %81 : vector<8x32xf32>
      %85 = vector.broadcast %82 : vector<8x1xf32> to vector<8x32xf32>
      %86 = arith.mulf %85, %84 : vector<8x32xf32>
      %c0_50 = arith.constant 0 : index
      %c0_51 = arith.constant 0 : index
      %87 = vector.load %arg9[%c0_50, %c0_51] : memref<8x32xf32, #tpu.memory_space<vmem>>, vector<8x32xf32>
      tpu.vector_store %arg9[%c0_50, %c0_51], %86 {strides = array<i32>} : memref<8x32xf32, #tpu.memory_space<vmem>>, vector<8x32xf32>,
    } else {
    }
    return
  }
  func.func @transform_0(%arg0: i32, %arg1: i32) -> (i32, i32) {
    %c0_i32 = arith.constant 0 : i32
    %c0_i32_0 = arith.constant 0 : i32
    return %arg0, %c0_i32 : i32, i32
  }
  func.func @transform_1(%arg0: i32, %arg1: i32) -> (i32, i32) {
    %c0_i32 = arith.constant 0 : i32
    %c0_i32_0 = arith.constant 0 : i32
    %c0_i32_1 = arith.constant 0 : i32
    return %c0_i32, %c0_i32_0 : i32, i32
  }
  func.func @transform_2(%arg0: i32, %arg1: i32) -> (i32, i32) {
    %c0_i32 = arith.constant 0 : i32
    %c0_i32_0 = arith.constant 0 : i32
    return %c0_i32, %arg1 : i32, i32
  }
  func.func @transform_3(%arg0: i32, %arg1: i32) -> (i32, i32) {
    %c0_i32 = arith.constant 0 : i32
    %c0_i32_0 = arith.constant 0 : i32
    return %c0_i32, %arg1 : i32, i32
  }
  func.func @transform_4(%arg0: i32, %arg1: i32) -> (i32, i32) {
    %c0_i32 = arith.constant 0 : i32
    %c0_i32_0 = arith.constant 0 : i32
    return %c0_i32, %arg1 : i32, i32
  }
  func.func @transform_5(%arg0: i32, %arg1: i32) -> (i32, i32) {
    %c0_i32 = arith.constant 0 : i32
    %c0_i32_0 = arith.constant 0 : i32
    return %arg1, %c0_i32 : i32, i32
  }
  func.func @transform_6(%arg0: i32, %arg1: i32) -> (i32, i32) {
    %c0_i32 = arith.constant 0 : i32
    %c0_i32_0 = arith.constant 0 : i32
    %c0_i32_1 = arith.constant 0 : i32
    return %c0_i32, %c0_i32_0 : i32, i32
  }
  func.func @transform_7(%arg0: i32, %arg1: i32) -> (i32, i32) {
    %c0_i32 = arith.constant 0 : i32
    %c0_i32_0 = arith.constant 0 : i32
    return %arg0, %c0_i32 : i32, i32
  }
}

</mosaic_0001>

<bundles_post_ra>
// kernel: moe_ffn.1
= control target key start
LH: loop header
LB: loop body
LE: loop exit
PB: predicated region body
PF: predicated region fallthrough
CT: control target
= control target key end

     0   :  { %12 = vsyncpa [#allocation7], 0  ;;  %s1173_s0 = inlined_call_operand.vmem [shape: f32[16,32], index: 0, kind: input, shape index: {}]   ;;  %s1174_s1 = inlined_call_operand.vmem [shape: f32[32,8], index: 1, kind: input, shape index: {}]   ;;  %s1175_s2 = inlined_call_operand.vmem [shape: f32[32,64], index: 2, kind: input, shape index: {}]   ;;  %s1176_s3 = inlined_call_operand.vmem [shape: f32[1,64], index: 3, kind: input, shape index: {}]   ;;  %s1177_s4 = inlined_call_operand.vmem [shape: s32[1,64], index: 4, kind: input, shape index: {}]   ;;  %s1178_s5 = inlined_call_operand.vmem [shape: f32[64,32], index: 5, kind: input, shape index: {}]   ;;  %s1179_s6 = inlined_call_operand.vmem [shape: f32[8,32], index: 6, kind: input, shape index: {}]   ;;  %s1180_s7 = inlined_call_operand.hbm [shape: f32[16,32], index: 7, kind: output, shape index: {}]  }
   0x1   :  { %14 = vsyncpa [#allocation7 + $0x1], 0  ;;  %s985_s24 = smov 0   ;;  %s987_s25 = smov 0  }
   0x2   :  { %s989_s26 = smov 0   ;;  %s991_s27 = smov 0  }
   0x3   :  { %s993_s28 = smov 0   ;;  %s995_s29 = smov 0  }
   0x4 LB: > { %s773_s30 = sadd.s32 4294967295, %s941_s29   ;;  %s774_s8 = sadd.s32 4294967294, %s941_s29   ;;  %s941_s29 = sphi %s995_s29, %s20_s29   ;;  %s937_s28 = sphi %s993_s28, %s1187_s28   ;;  %s933_s27 = sphi %s991_s27, %s1186_s27   ;;  %s929_s26 = sphi %s989_s26, %s1185_s26   ;;  %s925_s25 = sphi %s987_s25, %s1184_s25   ;;  %s921_s24 = sphi %s985_s24, %s1183_s24  }
   0x5   : > { %s32_s9 = sadd.s32 1, %s937_s28  ;;  %s211_s10 = sadd.s32 1, %s929_s26 }
   0x6   : > { %p34_p0 = scmp.ge.s32.totalorder %s32_s9, 2  ;;  %p221_p1 = scmp.ne.s32.totalorder %s929_s26, %s925_s25 }
   0x7   : > { %p222_p2 = scmp.eq.s32.totalorder %s773_s30, 1  ;;  %p227_p3 = scmp.ne.s32.totalorder %s925_s25, %s921_s24 }
   0x8   : > { %s1189_s9 = smov (%p34_p0, %s32_s9), 0  ;;  %p228_p5 = scmp.eq.s32.totalorder %s774_s8, 1 }
   0x9   : > { %p1025_p4 = por %p222_p2, %p221_p1  ;;  %s208_s12 = ssub.s32 %s937_s28, %s1189_s9 }
   0xa   : > { %p781_p6 = scmp.ge.s32.totalorder %s941_s29, 1  ;;  %p209_p7 = scmp.eq.s32.totalorder %s208_s12, 0 }
   0xb   : > { %p1032_p8 = por %p228_p5, %p227_p3  ;;  %p287_p9 = scmp.lt.s32.totalorder %s941_s29, 3 }
   0xc   : > { %s1038_s14 = scalar_select %p209_p7, %s929_s26, %s211_s10  }
   0xd   : > { %p288_p10 = pnand %p781_p6, %p287_p9 }
   0xe   : > { %p333_p11 = scmp.lt.s32.totalorder (!%p288_p10), %s933_s27, 1  ;;  %s330_s19 = sand.u32 (!%p288_p10), 1, %s925_s25  }
   0xf   : > { %291 = sbr.rel (%p288_p10) target bundleno = 1419 (0x58b), region = 48  ;;  %s782_s20 = sshll.u32 (!%p288_p10), %s330_s19, 3 }
  0x10   : > { %s332_s8 = scalar_lea.vmem (!%p288_p10), [#allocation6], %s782_s20  ;;  %s637_s15 = scalar_lea.sflag (!%p288_p10), [#allocation7], %s330_s19 }
  0x11   : > { %s649_s10 = sshll.u32 (!%p288_p10), %s332_s8, 4  ;;  %s883_s20 = scalar_lea.hbm (!%p288_p10), %s1180_s7, 16  ;;  %s650_s10 = int_to_ptr.vmem [resolvable:$true] %s649_s10 }
  0x14   : > { %v361_v0 = vld [vmem:[%s1174_s1 + $0x18] sm:$0xff]  ;;  %v360_v1 = vld [vmem:[%s1174_s1 + $0x10] sm:$0xff]  ;;  %v359_v2 = vld [vmem:[%s1174_s1 + $0x8] sm:$0xff]  ;;  %s334_s21 = scalar_select %p333_p11, %s933_s27, 1  ;;  %vm362_vm0 = vcmask 261120   ;;  %vm386_vm1 = vcmask 64512   ;;  %v411_v25 = vlaneseq }
  0x15   : > { %378 = vmatpush.msra.mxu0 %v361_v0  ;;  %v358_v3 = vld [vmem:[%s1174_s1] sm:$0xff]  ;;  %v943_v36 = vmov 0   ;;  %vm456_vm8 = vcmask 7168   ;;  %v465_v51 = vld [vmem:[%s1175_s2 + $0x18] sm:$0xff]  ;;  %v464_v52 = vld [vmem:[%s1175_s2 + $0x10] sm:$0xff] }
  0x16   : > { %s783_s30 = sshll.u32 %s334_s21, 3  ;;  %v1064_v26 = vand.u32 127, %v411_v25  ;;  %850 = vset.pattern.permute.xlu2 %v943_v36  ;;  %852 = vset.pattern.permute.xlu1 %v943_v36  ;;  %v463_v53 = vld [vmem:[%s1175_s2 + $0x8] sm:$0xff]  ;;  %v462_v54 = vld [vmem:[%s1175_s2] sm:$0xff]  ;;  %s790_s21 = sshll.u32 %s933_s27, 3 }
  0x17   : > { %379 = vmatpush.msra.mxu0 %v360_v1  ;;  %s336_s12 = scalar_lea.vmem %s1173_s0, %s783_s30  ;;  %851 = vset.pattern.permute.xlu0 %v943_v36  ;;  %v854_v1 = vld [vmem:[%s1176_s3] ss:$0 sm:$0xff]  ;;  %v554_v25 = vld [vmem:[%s1178_s5 + $0x28] sm:$0xff]  ;;  %s647_s30 = scalar_lea.hbm %s1180_s7, %s790_s21 }
  0x18   : > { %v1057_v4 = vld [vmem:[%s336_s12] sm:$0xff]  ;;  %486 = vmatpush.msra.mxu1 %v465_v51  ;;  %s651_s12 = sshll.u32 %s647_s30, 4  ;;  %s652_s12 = int_to_ptr.hbm [resolvable:$true] %s651_s12 }
  0x19   : > { %380 = vmatpush.msra.mxu0 %v359_v2  ;;  %v853_v51 = vld [vmem:[%s1177_s4] ss:$0 sm:$0xff]  ;;  %s877_s16 = sshra.s32 %s652_s12, 4  ;;  %s878_s16 = int_to_ptr.hbm [resolvable:$true] %s877_s16 }
  0x1a   : > { %487 = vmatpush.msra.mxu1 %v464_v52  ;;  %s879_s27 = scalar_lea.hbm %s878_s16, 8  ;;  %p884_p1 = scmp.lt.s32.totalorder %s878_s16, %s1180_s7 }
  0x1b   : > { %381 = vmatpush.msra.mxu0 %v358_v3  ;;  %p880_p12 = scmp.ne.s32.totalorder %s878_s16, %s879_s27  ;;  %p885_p2 = scmp.lt.s32.totalorder %s883_s20, %s879_s27 }
  0x1c   : > { %784 = vmatmul.msk.f32.vlgmr.msra.gmra.mxu0 %vm362_vm0, %v1057_v4  ;;  %488 = vmatpush.msra.mxu1 %v463_v53 }
  0x1d   : > { %p881_p13 = pnand %p880_p12, %p1025_p4  ;;  %p886_p3 = por %p885_p2, %p884_p1 }
  0x1e   : > { %489 = vmatpush.msra.mxu1 %v462_v54 }
  0x1f   : > { %785 = vmatmul.msk.f32.vlgmr.msra.gmra.mxu1 %vm362_vm0, %v1057_v4  ;;  %p882_p0 = pneg %p881_p13 }
  0x21   : > { %p887_p5 = pnand %p886_p3, %p882_p0 }
  0x99   : > { %v383_v5 = vpop.f32.mrf.mxu0 }
  0x9a   : > { %v387_v6 = vsel %vm386_vm1, %v383_v5, -inf }
  0x9b   : > { %388 = vmax.xlane.f32.xlu0 %v387_v6 }
  0x9c   : > { %v491_v2 = vpop.f32.mrf.mxu1 }
  0x9d   : > { %v1092_v4 = vadd.f32 %v854_v1, %v491_v2 }
  0x9f   : > { %v494_v52 = vmul.f32 0.5, %v1092_v4 }
 0x10e   : > { %v389_v7 = vpop.xlane.xlu0 %388 }
 0x10f   : > { %v390_v8 = vsub.f32 %v383_v5, %v389_v7  ;;  %v1095_v5 = vmul.f32 0.70710677, %v1092_v4 }
 0x111   : > { %v391_v9 = vmul.f32 1.442695, %v390_v8  ;;  %v496_v6 = vand.u32 2147483647, %v1095_v5 }
 0x113   : > { %855 = vpow2.f32 %v391_v9  ;;  %v497_v7 = vmul.f32 0.3275911, %v496_v6 }
 0x115   : > { %v498_v8 = vadd.f32 1.0, %v497_v7 }
 0x117   : > { %vm504_vm12 = vweird.f32 %v498_v8 }
 0x119   : > { %v856_v10 = vpop.eup %855 }
 0x11a   : > { %v393_v11 = vsel %vm386_vm1, %v856_v10, 0.0 }
 0x11b   : > { %394 = vadd.xlane.f32.xlu0 %v393_v11 }
 0x18e   : > { %v395_v12 = vpop.xlane.xlu0 %394 }
 0x18f   : > { %857 = vrcp.f32 %v395_v12  ;;  %v407_v16 = vand.u32 2147483648, %v395_v12  ;;  %v405_v18 = vand.u32 2147483647, %v395_v12  ;;  %vm401_vm3 = vweird.f32 %v395_v12 }
 0x190   : > { %859 = vrcp.f32 %v498_v8 }
 0x191   : > { %v408_v20 = vor.u32 1.1754944e-38, %v407_v16  ;;  %vm406_vm5 = vcmp.eq.f32.partialorder %v405_v18, 8.507059e+37 }
 0x195   : > { %v858_v13 = vpop.eup %857 }
 0x196   : > { %v397_v14 = vmul.f32 %v858_v13, %v395_v12  ;;  %vm402_vm2 = vweird.f32 %v858_v13  ;;  %v860_v9 = vpop.eup %859 }
 0x197   : > { %vm403_vm4 = vmor %vm401_vm3, %vm402_vm2  ;;  %vm505_vm13 = vweird.f32 %v860_v9 }
 0x198   : > { %v398_v15 = vsub.f32 1.0, %v397_v14  ;;  %vm506_vm14 = vmor %vm504_vm12, %vm505_vm13 }
 0x19a   : > { %v399_v17 = vmul.f32 %v858_v13, %v398_v15  ;;  %v508_v15 = vand.u32 2147483647, %v498_v8 }
 0x19c   : > { %v400_v19 = vadd.f32 %v858_v13, %v399_v17  ;;  %vm509_vm15 = vcmp.eq.f32.partialorder %v508_v15, 8.507059e+37 }
 0x19e   : > { %v404_v21 = vsel %vm403_vm4, %v858_v13, %v400_v19  ;;  %v510_v13 = vand.u32 2147483648, %v498_v8  ;;  %v601_v19 = vld [vmem:[%s1179_s6] sm:$0xff] }
 0x19f   : > { %v409_v22 = vsel %vm406_vm5, %v408_v20, %v404_v21  ;;  %621 = vmatpush.msra.mxu3 %v601_v19  ;;  %v944_v21 = vmov 0.0   ;;  %vm529_vm5 = vcmp.lt.f32.partialorder %v1095_v5, 0.0 }
 0x1a0   : > { %v410_v23 = vmul.f32 %v856_v10, %v409_v22  ;;  %v500_v10 = vmul.f32 %v860_v9, %v498_v8  ;;  %v511_v16 = vor.u32 1.1754944e-38, %v510_v13  ;;  %460 = vst.msk [vmem:[#allocation2] sm:$0xff] %vm362_vm0, %v944_v21 }
 0x1a2   : > { %v413_v24 = vsel %vm386_vm1, %v410_v23, -inf  ;;  %v501_v11 = vsub.f32 1.0, %v500_v10 }
 0x1a3   : > { %414 = vmax.xlane.f32.xlu1 %v413_v24  ;;  %v555_v24 = vld [vmem:[%s1178_s5 + $0x30] sm:$0xff] }
 0x1a4   : > { %v502_v12 = vmul.f32 %v860_v9, %v501_v11 }
 0x1a6   : > { %v503_v14 = vadd.f32 %v860_v9, %v502_v12 }
 0x1a8   : > { %v507_v17 = vsel %vm506_vm14, %v860_v9, %v503_v14 }
 0x1a9   : > { %v512_v18 = vsel %vm509_vm15, %v511_v16, %v507_v17 }
 0x1aa   : > { %v514_v20 = vmul.f32 1.0614054, %v512_v18 }
 0x1ac   : > { %v515_v22 = vadd.f32 -1.4531521, %v514_v20 }
 0x216   : > { %v415_v27 = vpop.xlane.xlu1 %414 }
 0x217   : > { %vm416_vm6 = vcmp.eq.f32.partialorder %v410_v23, %v415_v27 }
 0x218   : > { %v417_v28 = vsel %vm416_vm6, %v1064_v26, 8 }
 0x219   : > { %v418_v29 = vsel %vm386_vm1, %v417_v28, 2147483647  ;;  %v553_v28 = vld [vmem:[%s1178_s5 + $0x20] sm:$0xff] }
 0x21a   : > { %v420_v30 = vshra.s32 %v418_v29, 16  ;;  %v419_v32 = vand.u32 65535, %v418_v29  ;;  %v552_v29 = vld [vmem:[%s1178_s5 + $0x18] sm:$0xff] }
 0x21c   : > { %v422_v31 = vcvt.s32.f32 %v420_v30  ;;  %v421_v34 = vcvt.s32.f32 %v419_v32  ;;  %v523_v32 = vsub.f32 0.0, %v496_v6 }
 0x21e   : > { %423 = vmin.xlane.f32.xlu1 %v422_v31 }
 0x291   : > { %v424_v33 = vpop.xlane.xlu1 %423 }
 0x292   : > { %vm425_vm7 = vcmp.eq.f32.partialorder %v422_v31, %v424_v33  ;;  %v430_v37 = vcvt.f32.s32 %v424_v33  ;;  %v551_v31 = vld [vmem:[%s1178_s5 + $0x10] sm:$0xff] }
 0x293   : > { %v426_v35 = vsel %vm425_vm7, %v421_v34, inf  ;;  %v524_v34 = vmul.f32 %v523_v32, %v496_v6 }
 0x294   : > { %427 = vmin.xlane.f32.xlu2 %v426_v35  ;;  %v431_v39 = vshll.u32 %v430_v37, 16  ;;  %v550_v37 = vld [vmem:[%s1178_s5 + $0x8] sm:$0xff] }
 0x307   : > { %v428_v38 = vpop.xlane.xlu2 %427 }
 0x308   : > { %v429_v40 = vcvt.f32.s32 %v428_v38  ;;  %v525_v38 = vmul.f32 1.442695, %v524_v34 }
 0x30a   : > { %v432_v41 = vadd.s32 %v431_v39, %v429_v40  ;;  %v549_v39 = vld [vmem:[%s1178_s5] sm:$0xff]  ;;  %861 = vpow2.f32 %v525_v38 }
 0x30c   : > { %458 = vst.msk [vmem:[#allocation4] sm:$0xff] %vm456_vm8, %v432_v41  ;;  %vm433_vm9 = vcmp.eq.s32.totalorder %v1064_v26, %v432_v41 }
 0x30d   : > { %v434_v42 = vsel %vm433_vm9, -inf, %v410_v23  ;;  %v556_v23 = vld [vmem:[%s1178_s5 + $0x38] sm:$0xff] }
 0x30e   : > { %v435_v43 = vsel %vm386_vm1, %v434_v42, -inf  ;;  %569 = vmatpush.msra.mxu2 %v556_v23 }
 0x30f   : > { %436 = vmax.xlane.f32.xlu2 %v435_v43 }
 0x310   : > { %570 = vmatpush.msra.mxu2 %v555_v24 }
 0x312   : > { %571 = vmatpush.msra.mxu2 %v554_v25 }
 0x313   : > { %v535_v44 = vld [vmem:[#allocation4] sm:$0xff] }
 0x314   : > { %572 = vmatpush.msra.mxu2 %v553_v28 }
 0x316   : > { %573 = vmatpush.msra.mxu2 %v552_v29 }
 0x318   : > { %574 = vmatpush.msra.mxu2 %v551_v31 }
 0x31a   : > { %575 = vmatpush.msra.mxu2 %v550_v37 }
 0x31c   : > { %576 = vmatpush.msra.mxu2 %v549_v39 }
 0x327   : > { %538 = vperm.xlu2 %850, %v535_v44  }
 0x382   : > { %v437_v45 = vpop.xlane.xlu2 %436 }
 0x383   : > { %vm438_vm10 = vcmp.eq.f32.partialorder %v434_v42, %v437_v45  ;;  %v455_v46 = vadd.f32 %v437_v45, %v415_v27  ;;  %v516_v27 = vmul.f32 %v515_v22, %v512_v18  ;;  %v862_v45 = vpop.eup %861 }
 0x384   : > { %v439_v47 = vsel %vm438_vm10, %v1064_v26, 8 }
 0x385   : > { %457 = vst.msk [vmem:[#allocation3] sm:$0xff] %vm456_vm8, %v455_v46  ;;  %v440_v48 = vsel %vm386_vm1, %v439_v47, 2147483647  ;;  %v517_v30 = vadd.f32 1.4214138, %v516_v27 }
 0x386   : > { %v442_v49 = vshra.s32 %v440_v48, 16  ;;  %v441_v55 = vand.u32 65535, %v440_v48 }
 0x387   : > { %v518_v33 = vmul.f32 %v517_v30, %v512_v18 }
 0x388   : > { %v444_v50 = vcvt.s32.f32 %v442_v49  ;;  %v443_v57 = vcvt.s32.f32 %v441_v55 }
 0x389   : > { %v519_v35 = vadd.f32 -0.28449672, %v518_v33 }
 0x38a   : > { %445 = vmin.xlane.f32.xlu0 %v444_v50  ;;  %v539_v36 = vpop.permute.xlu2 %538 }
 0x38b   : > { %v520_v40 = vmul.f32 %v519_v35, %v512_v18  ;;  %vm540_vm6 = vcmp.eq.s32.totalorder %v853_v51, %v539_v36 }
 0x38c   : > { %v626_v3 = vld [vmem:[#allocation3] sm:$0xff] }
 0x38d   : > { %v521_v42 = vadd.f32 0.2548296, %v520_v40 }
 0x3fd   : > { %v446_v56 = vpop.xlane.xlu0 %445 }
 0x3fe   : > { %vm447_vm11 = vcmp.eq.f32.partialorder %v444_v50, %v446_v56  ;;  %v452_v59 = vcvt.f32.s32 %v446_v56  ;;  %v548_v56 = vld [vmem:[#allocation2] sm:$0xff] }
 0x3ff   : > { %v448_v58 = vsel %vm447_vm11, %v443_v57, inf }
 0x400   : > { %449 = vmin.xlane.f32.xlu1 %v448_v58  ;;  %v453_v61 = vshll.u32 %v452_v59, 16 }
 0x419   : > { %590 = vperm.xlu1 %852, %v535_v44   ;;  %v522_v44 = vmul.f32 %v521_v42, %v512_v18 }
 0x41b   : > { %v527_v47 = vmul.f32 %v862_v45, %v522_v44 }
 0x41d   : > { %v528_v48 = vsub.f32 1.0, %v527_v47 }
 0x41f   : > { %v530_v49 = vsub.f32 0.0, %v528_v48 }
 0x421   : > { %v531_v50 = vsel %vm529_vm5, %v530_v49, %v528_v48 }
 0x473   : > { %v450_v60 = vpop.xlane.xlu1 %449 }
 0x474   : > { %v451_v62 = vcvt.f32.s32 %v450_v60 }
 0x476   : > { %v454_v63 = vadd.s32 %v453_v61, %v451_v62 }
 0x478   : > { %459 = vst.msk [vmem:[#allocation5] sm:$0xff] %vm456_vm8, %v454_v63 }
 0x47f   : > { %v593_v0 = vld [vmem:[#allocation5] sm:$0xff] }
 0x480   : > { %595 = vperm.xlu2 %850, %v593_v0   ;;  %543 = vperm.xlu0 %851, %v593_v0  }
 0x488   : > { %631 = vperm.xlu2 %850, %v626_v3  }
 0x48b   : > { %v591_v41 = vpop.permute.xlu1 %590 }
 0x48c   : > { %vm592_vm2 = vcmp.eq.s32.totalorder %v1064_v26, %v591_v41 }
 0x4da   : > { %v596_v43 = vpop.permute.xlu2 %595 }
 0x4db   : > { %vm597_vm3 = vcmp.eq.s32.totalorder %v1064_v26, %v596_v43  ;;  %v532_v26 = vadd.f32 1.0, %v531_v50 }
 0x4dc   : > { %vm598_vm4 = vmor %vm592_vm2, %vm597_vm3 }
 0x4dd   : > { %v787_v46 = vsel %vm598_vm4, 1.0, %v944_v21  ;;  %v533_v54 = vmul.f32 %v532_v26, %v494_v52 }
 0x4de   : > { %788 = vmatmul.msk.f32.vlgmr.msra.gmra.mxu3 %vm386_vm1, %v787_v46  ;;  %vm557_vm1 = vcmask 523264  }
 0x4e2   : > { %v632_v62 = vpop.permute.xlu2 %631 }
 0x4f2   : > { %v544_v53 = vpop.permute.xlu0 %543 }
 0x4f3   : > { %vm545_vm7 = vcmp.eq.s32.totalorder %v853_v51, %v544_v53 }
 0x4f4   : > { %vm546_vm8 = vmor %vm540_vm6, %vm545_vm7 }
 0x4f5   : > { %v547_v55 = vsel %vm546_vm8, %v533_v54, 0.0 }
 0x4f6   : > { %786 = vmatmul.msk.f32.vlgmr.msra.gmra.mxu2 %vm557_vm1, %v547_v55 }
 0x561   : > { %v623_v59 = vpop.f32.mrf.mxu3 }
 0x579   : > { %v578_v57 = vpop.f32.mrf.mxu2 }
 0x57a   : > { %v581_v58 = vadd.f32 %v578_v57, %v548_v56 }
 0x57c   : > { %582 = vst.msk [vmem:[#allocation2] sm:$0xff] %vm362_vm0, %v581_v58 }
 0x583   : > { %v627_v60 = vld [vmem:[#allocation2] sm:$0xff] }
 0x584   : > { %v628_v61 = vadd.f32 %v627_v60, %v623_v59 }
 0x586   : > { %v634_v63 = vmul.f32 %v632_v62, %v628_v61 }
 0x588   : > { %635 = vst.msk [vmem:[%s332_s8] sm:$0xff] %vm362_vm0, %v634_v63 }
 0x589   : > { %890 = shalt.err (!%p887_p5)
}
 0x58a   : > { %793 = dma.vmem_to_hbm [thread:$0]  (%p1025_p4), %s650_s10, 128, %s652_s12, %s637_s15  }
 0x58b PF: > { %p799_p6 = scmp.ge.s32.totalorder %s941_s29, 2  ;;  %s663_s19 = sand.u32 1, %s921_s24  }
 0x58c   : > { %s664_s23 = scalar_lea.sflag [#allocation7], %s663_s19 }
 0x58d   : > { %p796_p7 = pnand %p799_p6, %p1032_p8 }
 0x58f   : > { %p797_p9 = pneg %p796_p7 }
 0x591   : > { %916 = dma.done.wait (%p797_p9), %s664_s23, 128  }
 0x592   : > { %918 = vsyncadd (%p797_p9), %s664_s23, 4294967168  ;;  %s20_s29 = sadd.s32 1, %s941_s29   ;;  %s1183_s24 = smov %s925_s25 }
 0x593   : > { %p17_p10 = scmp.ge.s32.totalorder %s20_s29, 4   ;;  %s1184_s25 = smov %s929_s26 }
 0x594   : > { %s1185_s26 = smov %s1038_s14  ;;  %s1186_s27 = smov %s937_s28 }
 0x595   : > { %s1187_s28 = smov %s1189_s9  ;;  %19 = sbr.rel (!%p17_p10) target bundleno = 4 (0x4), region = 103 }
 0x59a   :  { %670 = vsyncpa [#allocation7], 1 }
 0x59b   :  { %672 = vsyncpa [#allocation7 + $0x1], 1 }

</bundles_post_ra>
